<compile_context>
chip_gen: v7x
topology: tpu7x:2x2x1
jax: 0.10.0
libtpu: 0.0.40
codegen_flags: <defaults>
</compile_context>

<pallas_src>
import functools
import math

import jax
import jax.numpy as jnp
import numpy as np
from jax import lax
from jax.experimental import pallas as pl
from jax.experimental.pallas import tpu as pltpu

# Scaled-down NetParameter = {'nInput': 300, 'nEmb': 256, 'nFw': 512, 'nAttnHead': 4}
N_INPUT = 32
N_EMB = 64
N_FW = 128
N_HEAD = 4
HEAD_DIM = N_EMB // N_HEAD
EPS = 1e-5

# Row layout of the packed (7, N_EMB) bias / LayerNorm operand.
_B2, _G1, _BE1, _BO, _BF2, _G2, _BE2 = range(7)
# Row layout of the packed (2, N_FW) bias operand.
_B1, _BF1 = range(2)


def _bf16(x):
    return x.astype(jnp.bfloat16)


def _mm(a, b):
    """MXU matmul: bf16 operands, f32 accumulation."""
    return jnp.dot(_bf16(a), _bf16(b), preferred_element_type=jnp.float32)


def _ln_affine(x, gamma, beta):
    mean = jnp.mean(x, axis=-1, keepdims=True)
    var = jnp.mean((x - mean) ** 2, axis=-1, keepdims=True)
    return (x - mean) * lax.rsqrt(var + EPS) * gamma + beta


# ----------------------------------------------------------------------------
# Fused kernel: encoder front (+ optional transformer encoder layer)
# ----------------------------------------------------------------------------
def _fused_kernel(n_layer, b_tile, seq, *refs):
    if n_layer == 0:
        x_ref, w1_ref, w2_ref, bfw_ref, bemb_ref, o_ref = refs
        ctx_ref = None
    else:
        (x_ref, w1_ref, w2_ref, wqkv_ref, bqkv_ref, wo_ref,
         wf1_ref, wf2_ref, bfw_ref, bemb_ref, o_ref, ctx_ref) = refs

    E, H, D, L = N_EMB, N_HEAD, HEAD_DIM, seq
    f32 = jnp.float32

    w1 = _bf16(w1_ref[...])                        # (nInput, nFw)  bf16
    w2 = _bf16(w2_ref[...])                        # (nFw, nEmb)    bf16
    b1 = bfw_ref[_B1:_B1 + 1, :]                   # (1, nFw)  f32
    b2 = bemb_ref[_B2:_B2 + 1, :]                  # (1, nEmb) f32

    # --- encoder front --------------------------------------------------------
    # conv1d(kernel=1) == matmul contracting the channel axis of the raw NCL
    # block (no wrapper / HBM transpose):  h[l, f] = sum_c x[b, c, l] * w1[c, f].
    h_rows = [
        lax.dot_general(_bf16(x_ref[b]), w1,
                        dimension_numbers=(((0,), (0,)), ((), ())),
                        preferred_element_type=f32)                 # (L, nFw)
        for b in range(b_tile)
    ]
    h = jnp.concatenate(h_rows, axis=0) if b_tile > 1 else h_rows[0]   # (B*L, nFw)
    h = jnp.maximum(h + b1, 0.0)
    y = _mm(h, w2) + b2                                                # (B*L, nEmb)

    # F.layer_norm(x, [x.size(-1)]) on the NCL tensor == normalize over the
    # sequence axis per (batch, channel), no affine.
    y_rows = []
    for b in range(b_tile):
        yb = y[b * L:(b + 1) * L, :]
        mu = jnp.mean(yb, axis=0, keepdims=True)
        var = jnp.mean((yb - mu) ** 2, axis=0, keepdims=True)
        y_rows.append((yb - mu) * lax.rsqrt(var + EPS))
    y = jnp.concatenate(y_rows, axis=0) if b_tile > 1 else y_rows[0]

    if n_layer == 0:
        for b in range(b_tile):                    # lane-dense output slab
            o_ref[:, b * E:(b + 1) * E] = y[b * L:(b + 1) * L, :]
        return

    # --- transformer encoder layer (post-norm, relu FFN, eval: dropout = id) ---
    g1 = bemb_ref[_G1:_G1 + 1, :]
    be1 = bemb_ref[_BE1:_BE1 + 1, :]
    bo = bemb_ref[_BO:_BO + 1, :]
    bf2 = bemb_ref[_BF2:_BF2 + 1, :]
    g2 = bemb_ref[_G2:_G2 + 1, :]
    be2 = bemb_ref[_BE2:_BE2 + 1, :]
    bf1 = bfw_ref[_BF1:_BF1 + 1, :]

    # Fused QKV: one (B*L, E) @ (E, 3E) matmul instead of 12 per-head ones.
    qkv = _mm(y, wqkv_ref[...]) + bqkv_ref[...]                        # (B*L, 3E)

    scale = 1.0 / math.sqrt(D)
    for b in range(b_tile):                        # static unroll; per-seq softmax
        rows_b = qkv[b * L:(b + 1) * L, :]
        for hh in range(H):
            qh = _bf16(rows_b[:, hh * D:(hh + 1) * D])
            kh = _bf16(rows_b[:, E + hh * D:E + (hh + 1) * D])
            vh = _bf16(rows_b[:, 2 * E + hh * D:2 * E + (hh + 1) * D])
            s = lax.dot_general(qh, kh, (((1,), (1,)), ((), ())),
                                preferred_element_type=f32) * scale     # (L, L)
            s = s - jnp.max(s, axis=-1, keepdims=True)
            p = jnp.exp(s)
            p = p * pl.reciprocal(jnp.sum(p, axis=-1, keepdims=True), approx=True)
            ctx_ref[b * L:(b + 1) * L, hh * D:(hh + 1) * D] = jnp.dot(
                _bf16(p), vh, preferred_element_type=f32)               # (L, D)

    # Single output projection over all heads and all sequences in the block.
    attn = _mm(ctx_ref[...], wo_ref[...]) + bo                          # (B*L, E)

    h1 = _ln_affine(y + attn, g1, be1)
    ff = jnp.maximum(_mm(h1, wf1_ref[...]) + bf1, 0.0)                  # (B*L, nFw)
    ff = _mm(ff, wf2_ref[...]) + bf2                                    # (B*L, nEmb)
    out = _ln_affine(h1 + ff, g2, be2)

    for b in range(b_tile):                        # lane-dense output slab
        o_ref[:, b * E:(b + 1) * E] = out[b * L:(b + 1) * L, :]


def _pick_b_tile(n):
    """Batch items per grid step.

    The lane-dense (L, b_tile*N_EMB) output block wants b_tile*N_EMB to be a
    multiple of 128 lanes (or cover the full batch); prefer >= 2 grid steps so
    both v7x TensorCores get work when the batch allows it.
    """
    for bt in (8, 4, 2):
        if n % bt == 0 and n // bt >= 2:
            return bt
    return n


def attn_weight_model(x_ncl, pp, n_layer):
    """x_ncl: (N, nInput, L) like the PyTorch Conv1d input.  Returns (L, N, nEmb)."""
    n, c, l = x_ncl.shape
    assert c == N_INPUT
    b_tile = _pick_b_tile(n)
    grid = (n // b_tile,)

    def rep(shape):  # operand replicated across the grid
        return pl.BlockSpec(shape, lambda i: (0,) * len(shape))

    in_specs = [pl.BlockSpec((b_tile, N_INPUT, l), lambda i: (i, 0, 0)),
                rep((N_INPUT, N_FW)), rep((N_FW, N_EMB))]
    args = [x_ncl, pp["w1"], pp["w2"]]
    scratch = []
    if n_layer == 1:
        in_specs += [rep((N_EMB, 3 * N_EMB)), rep((1, 3 * N_EMB)),
                     rep((N_EMB, N_EMB)), rep((N_EMB, N_FW)), rep((N_FW, N_EMB))]
        args += [pp["wqkv"], pp["bqkv"], pp["wo"], pp["wf1"], pp["wf2"]]
        scratch = [pltpu.VMEM((b_tile * l, N_EMB), jnp.float32)]
    in_specs += [rep((2, N_FW)), rep((7, N_EMB))]
    args += [pp["bias_fw"], pp["bias_emb"]]

    out_flat = pl.pallas_call(
        functools.partial(_fused_kernel, n_layer, b_tile, l),
        out_shape=jax.ShapeDtypeStruct((l, n * N_EMB), jnp.float32),
        grid_spec=pltpu.PrefetchScalarGridSpec(
            num_scalar_prefetch=0,
            grid=grid,
            in_specs=in_specs,
            out_specs=pl.BlockSpec((l, b_tile * N_EMB), lambda i: (0, i)),
            scratch_shapes=scratch,
        ),
        compiler_params=pltpu.CompilerParams(dimension_semantics=("parallel",)),
    )(*args)
    # (L, N*nEmb) lane-dense slab -> (L, N, nEmb); pure reshape, no transpose.
    return out_flat.reshape(l, n, N_EMB)


# ----------------------------------------------------------------------------
# Parameters (deterministic, synthetic) + packing into the fused operand layout
# ----------------------------------------------------------------------------
def init_params(key):
    ks = jax.random.split(key, 20)
    r = lambda k, shape: 0.1 * jax.random.normal(k, shape, jnp.float32)
    return {
        # conv1d(k=1) weights stored in matmul layout (in, out)
        "w1": r(ks[0], (N_INPUT, N_FW)), "b1": r(ks[1], (1, N_FW)),
        "w2": r(ks[2], (N_FW, N_EMB)), "b2": r(ks[3], (1, N_EMB)),
        # attention projections (in, out) + biases
        "wq": r(ks[4], (N_EMB, N_EMB)), "bq": r(ks[5], (1, N_EMB)),
        "wk": r(ks[6], (N_EMB, N_EMB)), "bk": r(ks[7], (1, N_EMB)),
        "wv": r(ks[8], (N_EMB, N_EMB)), "bv": r(ks[9], (1, N_EMB)),
        "wo": r(ks[10], (N_EMB, N_EMB)), "bo": r(ks[11], (1, N_EMB)),
        "g1": 1.0 + r(ks[12], (1, N_EMB)), "be1": r(ks[13], (1, N_EMB)),
        "wf1": r(ks[14], (N_EMB, N_FW)), "bf1": r(ks[15], (1, N_FW)),
        "wf2": r(ks[16], (N_FW, N_EMB)), "bf2": r(ks[17], (1, N_EMB)),
        "g2": 1.0 + r(ks[18], (1, N_EMB)), "be2": r(ks[19], (1, N_EMB)),
    }


def pack_params(p):
    """Pack weights/biases into the fused-kernel operand layout (done once).

    MXU weight operands are pre-cast to bf16 (halves weight DMA bytes); biases
    and LayerNorm affine vectors stay f32.
    """
    bf = lambda a: a.astype(jnp.bfloat16)
    return {
        "w1": bf(p["w1"]), "w2": bf(p["w2"]),
        "wqkv": bf(jnp.concatenate([p["wq"], p["wk"], p["wv"]], axis=1)),  # (E, 3E)
        "bqkv": jnp.concatenate([p["bq"], p["bk"], p["bv"]], axis=1),      # (1, 3E)
        "wo": bf(p["wo"]), "wf1": bf(p["wf1"]), "wf2": bf(p["wf2"]),
        "bias_fw": jnp.concatenate([p["b1"], p["bf1"]], axis=0),           # (2, nFw)
        "bias_emb": jnp.concatenate(
            [p["b2"], p["g1"], p["be1"], p["bo"], p["bf2"], p["g2"], p["be2"]],
            axis=0),                                                        # (7, nEmb)
    }


# ----------------------------------------------------------------------------
# Pure-JAX reference (mirrors the PyTorch forward, eval mode)
# ----------------------------------------------------------------------------
def reference_model(x_ncl, p, n_layer, *, match_mxu=False):
    """match_mxu=True mirrors the kernel's MXU precision (bf16 operands, f32
    accumulation); match_mxu=False is a strict f32 (HIGHEST) reference."""
    if match_mxu:
        def mm(eq, a, b):
            return jnp.einsum(eq, a.astype(jnp.bfloat16), b.astype(jnp.bfloat16),
                              preferred_element_type=jnp.float32)
    else:
        def mm(eq, a, b):
            return jnp.einsum(eq, a, b, precision=lax.Precision.HIGHEST)

    x = jnp.transpose(x_ncl, (0, 2, 1))                          # (N, L, nInput)
    h = jax.nn.relu(mm("nlc,cf->nlf", x, p["w1"]) + p["b1"])
    y = mm("nlf,fe->nle", h, p["w2"]) + p["b2"]                  # (N, L, nEmb)
    mu = y.mean(axis=1, keepdims=True)
    var = ((y - mu) ** 2).mean(axis=1, keepdims=True)
    y = (y - mu) * lax.rsqrt(var + EPS)
    if n_layer == 1:
        n, l, e = y.shape
        q = (mm("nle,ed->nld", y, p["wq"]) + p["bq"]).reshape(n, l, N_HEAD, HEAD_DIM)
        k = (mm("nle,ed->nld", y, p["wk"]) + p["bk"]).reshape(n, l, N_HEAD, HEAD_DIM)
        v = (mm("nle,ed->nld", y, p["wv"]) + p["bv"]).reshape(n, l, N_HEAD, HEAD_DIM)
        s = mm("nlhd,nmhd->nhlm", q, k) / math.sqrt(HEAD_DIM)
        pw = jax.nn.softmax(s, axis=-1)
        ctx = mm("nhlm,nmhd->nlhd", pw, v).reshape(n, l, e)
        attn = mm("nle,ef->nlf", ctx, p["wo"]) + p["bo"]
        h1 = _ln_affine(y + attn, p["g1"], p["be1"])
        ff = jax.nn.relu(mm("nle,ef->nlf", h1, p["wf1"]) + p["bf1"])
        ff = mm("nlf,fe->nle", ff, p["wf2"]) + p["bf2"]
        y = _ln_affine(h1 + ff, p["g2"], p["be2"])
    return jnp.transpose(y, (1, 0, 2))                           # (L, N, nEmb)


if __name__ == "__main__":
    # TODO(synk): dropout inside nn.TransformerEncoderLayer is a training-mode RNG
    # op; eval-mode semantics (identity) are implemented here.
    key = jax.random.PRNGKey(0)
    kx, kp = jax.random.split(key)
    N, L = 2, 16
    x = jax.random.normal(kx, (N, N_INPUT, L), jnp.float32)      # NCL, like Conv1d input
    params = init_params(kp)
    packed = pack_params(params)

    for n_layer in (0, 1):
        run = jax.jit(functools.partial(attn_weight_model, n_layer=n_layer))
        out = jax.block_until_ready(run(x, packed))
        assert out.shape == (L, N, N_EMB), out.shape

        # Check against a reference that matches the kernel's MXU precision
        # (bf16 operands, f32 accumulation; softmax/LN in f32).
        ref_mxu = jax.block_until_ready(
            reference_model(x, params, n_layer, match_mxu=True))
        np.testing.assert_allclose(np.asarray(out), np.asarray(ref_mxu),
                                   rtol=1e-2, atol=1e-2)

        # Looser check against the strict f32 reference; the gap is the bf16 MXU
        # operand rounding.
        ref_f32 = jax.block_until_ready(
            reference_model(x, params, n_layer, match_mxu=False))
        np.testing.assert_allclose(np.asarray(out), np.asarray(ref_f32),
                                   rtol=1e-1, atol=1e-1)

    print("KERNEL_OK")
</pallas_src>

<mosaic_0001>
module attributes {stable_mosaic.version = 11 : i64} {
  func.func @_fused_kernel(%arg0: i32, %arg1: memref<2x32x16xf32, #tpu.memory_space<vmem>>, %arg2: memref<32x128xbf16, #tpu.memory_space<vmem>>, %arg3: memref<128x64xbf16, #tpu.memory_space<vmem>>, %arg4: memref<2x128xf32, #tpu.memory_space<vmem>>, %arg5: memref<7x64xf32, #tpu.memory_space<vmem>>, %arg6: memref<16x128xf32, #tpu.memory_space<vmem>>) attributes {dimension_semantics = [#tpu.dimension_semantics<parallel>], iteration_bounds = array<i64: 1>, scalar_prefetch = 0 : i64, scratch_operands = 0 : i64, tpu.core_type = #tpu.core_type<tc>, window_params = [{transform_indices = @transform_0, window_bounds = array<i64: 2, 32, 16>}, {pipeline_mode = #tpu.pipeline_mode<synchronous>, transform_indices = @transform_1, window_bounds = array<i64: 32, 128>}, {pipeline_mode = #tpu.pipeline_mode<synchronous>, transform_indices = @transform_2, window_bounds = array<i64: 128, 64>}, {pipeline_mode = #tpu.pipeline_mode<synchronous>, transform_indices = @transform_3, window_bounds = array<i64: 2, 128>}, {pipeline_mode = #tpu.pipeline_mode<synchronous>, transform_indices = @transform_4, window_bounds = array<i64: 7, 64>}, {transform_indices = @transform_5, window_bounds = array<i64: 16, 128>}]} {
    %c0 = arith.constant 0 : index
    %c0_0 = arith.constant 0 : index
    %0 = vector.load %arg2[%c0, %c0_0] : memref<32x128xbf16, #tpu.memory_space<vmem>>, vector<32x128xbf16>
    %c0_1 = arith.constant 0 : index
    %c0_2 = arith.constant 0 : index
    %1 = vector.load %arg3[%c0_1, %c0_2] : memref<128x64xbf16, #tpu.memory_space<vmem>>, vector<128x64xbf16>
    %c0_3 = arith.constant 0 : index
    %c0_4 = arith.constant 0 : index
    %2 = vector.load %arg4[%c0_3, %c0_4] : memref<2x128xf32, #tpu.memory_space<vmem>>, vector<1x128xf32>
    %c0_5 = arith.constant 0 : index
    %c0_6 = arith.constant 0 : index
    %3 = vector.load %arg5[%c0_5, %c0_6] : memref<7x64xf32, #tpu.memory_space<vmem>>, vector<1x64xf32>
    %c0_7 = arith.constant 0 : index
    %c0_8 = arith.constant 0 : index
    %c0_9 = arith.constant 0 : index
    %4 = vector.load %arg1[%c0_7, %c0_8, %c0_9] : memref<2x32x16xf32, #tpu.memory_space<vmem>>, vector<1x32x16xf32>
    %5 = vector.shape_cast %4 : vector<1x32x16xf32> to vector<32x16xf32>
    %6 = arith.truncf %5 : vector<32x16xf32> to vector<32x16xbf16>
    %cst = arith.constant dense<0.000000e+00> : vector<16x128xf32>
    %7 = tpu.matmul %6, %0, %cst {dimension_numbers = #tpu.dot_dimension_numbers<[0], [0], [1], [1], [0, 1, 1, 1], [], []>} : vector<32x16xbf16>, vector<32x128xbf16>, vector<16x128xf32> -> vector<16x128xf32>
    %c1 = arith.constant 1 : index
    %c0_10 = arith.constant 0 : index
    %c0_11 = arith.constant 0 : index
    %8 = vector.load %arg1[%c1, %c0_10, %c0_11] : memref<2x32x16xf32, #tpu.memory_space<vmem>>, vector<1x32x16xf32>
    %9 = vector.shape_cast %8 : vector<1x32x16xf32> to vector<32x16xf32>
    %10 = arith.truncf %9 : vector<32x16xf32> to vector<32x16xbf16>
    %cst_12 = arith.constant dense<0.000000e+00> : vector<16x128xf32>
    %11 = tpu.matmul %10, %0, %cst_12 {dimension_numbers = #tpu.dot_dimension_numbers<[0], [0], [1], [1], [0, 1, 1, 1], [], []>} : vector<32x16xbf16>, vector<32x128xbf16>, vector<16x128xf32> -> vector<16x128xf32>
    %12 = tpu.concatenate %7, %11 in 0 : vector<16x128xf32>, vector<16x128xf32> -> vector<32x128xf32>
    %13 = vector.broadcast %2 : vector<1x128xf32> to vector<32x128xf32>
    %14 = arith.addf %12, %13 : vector<32x128xf32>
    %cst_13 = arith.constant 0.000000e+00 : f32
    %15 = vector.broadcast %cst_13 : f32 to vector<32x128xf32>
    %16 = arith.maximumf %14, %15 : vector<32x128xf32>
    %17 = arith.truncf %16 : vector<32x128xf32> to vector<32x128xbf16>
    %cst_14 = arith.constant dense<0.000000e+00> : vector<32x64xf32>
    %18 = tpu.matmul %17, %1, %cst_14 {dimension_numbers = #tpu.dot_dimension_numbers<[1], [0], [0], [1], [0, 0, 1, 1], [], []>} : vector<32x128xbf16>, vector<128x64xbf16>, vector<32x64xf32> -> vector<32x64xf32>
    %19 = vector.broadcast %3 : vector<1x64xf32> to vector<32x64xf32>
    %20 = arith.addf %18, %19 : vector<32x64xf32>
    %21 = vector.extract_strided_slice %20 {offsets = [0, 0], sizes = [16, 64], strides = [1, 1]} : vector<32x64xf32> to vector<16x64xf32>
    %cst_15 = arith.constant dense<0.000000e+00> : vector<64xf32>
    %22 = vector.multi_reduction <add>, %21, %cst_15 [0] : vector<16x64xf32> to vector<64xf32>
    %23 = vector.shape_cast %22 : vector<64xf32> to vector<1x64xf32>
    %cst_16 = arith.constant 1.600000e+01 : f32
    %24 = vector.broadcast %cst_16 : f32 to vector<1x64xf32>
    %25 = arith.divf %23, %24 : vector<1x64xf32>
    %26 = vector.broadcast %25 : vector<1x64xf32> to vector<16x64xf32>
    %27 = arith.subf %21, %26 : vector<16x64xf32>
    %28 = arith.mulf %27, %27 : vector<16x64xf32>
    %cst_17 = arith.constant dense<0.000000e+00> : vector<64xf32>
    %29 = vector.multi_reduction <add>, %28, %cst_17 [0] : vector<16x64xf32> to vector<64xf32>
    %30 = vector.shape_cast %29 : vector<64xf32> to vector<1x64xf32>
    %cst_18 = arith.constant 1.600000e+01 : f32
    %31 = vector.broadcast %cst_18 : f32 to vector<1x64xf32>
    %32 = arith.divf %30, %31 : vector<1x64xf32>
    %33 = vector.broadcast %25 : vector<1x64xf32> to vector<16x64xf32>
    %34 = arith.subf %21, %33 : vector<16x64xf32>
    %cst_19 = arith.constant 9.99999974E-6 : f32
    %35 = vector.broadcast %cst_19 : f32 to vector<1x64xf32>
    %36 = arith.addf %32, %35 : vector<1x64xf32>
    %37 = math.rsqrt %36 : vector<1x64xf32>
    %38 = vector.broadcast %37 : vector<1x64xf32> to vector<16x64xf32>
    %39 = arith.mulf %34, %38 : vector<16x64xf32>
    %40 = vector.extract_strided_slice %20 {offsets = [16, 0], sizes = [16, 64], strides = [1, 1]} : vector<32x64xf32> to vector<16x64xf32>
    %cst_20 = arith.constant dense<0.000000e+00> : vector<64xf32>
    %41 = vector.multi_reduction <add>, %40, %cst_20 [0] : vector<16x64xf32> to vector<64xf32>
    %42 = vector.shape_cast %41 : vector<64xf32> to vector<1x64xf32>
    %cst_21 = arith.constant 1.600000e+01 : f32
    %43 = vector.broadcast %cst_21 : f32 to vector<1x64xf32>
    %44 = arith.divf %42, %43 : vector<1x64xf32>
    %45 = vector.broadcast %44 : vector<1x64xf32> to vector<16x64xf32>
    %46 = arith.subf %40, %45 : vector<16x64xf32>
    %47 = arith.mulf %46, %46 : vector<16x64xf32>
    %cst_22 = arith.constant dense<0.000000e+00> : vector<64xf32>
    %48 = vector.multi_reduction <add>, %47, %cst_22 [0] : vector<16x64xf32> to vector<64xf32>
    %49 = vector.shape_cast %48 : vector<64xf32> to vector<1x64xf32>
    %cst_23 = arith.constant 1.600000e+01 : f32
    %50 = vector.broadcast %cst_23 : f32 to vector<1x64xf32>
    %51 = arith.divf %49, %50 : vector<1x64xf32>
    %52 = vector.broadcast %44 : vector<1x64xf32> to vector<16x64xf32>
    %53 = arith.subf %40, %52 : vector<16x64xf32>
    %cst_24 = arith.constant 9.99999974E-6 : f32
    %54 = vector.broadcast %cst_24 : f32 to vector<1x64xf32>
    %55 = arith.addf %51, %54 : vector<1x64xf32>
    %56 = math.rsqrt %55 : vector<1x64xf32>
    %57 = vector.broadcast %56 : vector<1x64xf32> to vector<16x64xf32>
    %58 = arith.mulf %53, %57 : vector<16x64xf32>
    %59 = tpu.concatenate %39, %58 in 0 : vector<16x64xf32>, vector<16x64xf32> -> vector<32x64xf32>
    %60 = vector.extract_strided_slice %59 {offsets = [0, 0], sizes = [16, 64], strides = [1, 1]} : vector<32x64xf32> to vector<16x64xf32>
    %c0_25 = arith.constant 0 : index
    %c0_26 = arith.constant 0 : index
    %61 = vector.load %arg6[%c0_25, %c0_26] : memref<16x128xf32, #tpu.memory_space<vmem>>, vector<16x64xf32>
    tpu.vector_store %arg6[%c0_25, %c0_26], %60 {strides = array<i32>} : memref<16x128xf32, #tpu.memory_space<vmem>>, vector<16x64xf32>,
    %62 = vector.extract_strided_slice %59 {offsets = [16, 0], sizes = [16, 64], strides = [1, 1]} : vector<32x64xf32> to vector<16x64xf32>
    %c0_27 = arith.constant 0 : index
    %c64 = arith.constant 64 : index
    %63 = vector.load %arg6[%c0_27, %c64] : memref<16x128xf32, #tpu.memory_space<vmem>>, vector<16x64xf32>
    tpu.vector_store %arg6[%c0_27, %c64], %62 {strides = array<i32>} : memref<16x128xf32, #tpu.memory_space<vmem>>, vector<16x64xf32>,
    return
  }
  func.func @transform_0(%arg0: i32) -> (i32, i32, i32) {
    %c0_i32 = arith.constant 0 : i32
    %c0_i32_0 = arith.constant 0 : i32
    %c0_i32_1 = arith.constant 0 : i32
    return %arg0, %c0_i32, %c0_i32_0 : i32, i32, i32
  }
  func.func @transform_1(%arg0: i32) -> (i32, i32) {
    %c0_i32 = arith.constant 0 : i32
    %c0_i32_0 = arith.constant 0 : i32
    %c0_i32_1 = arith.constant 0 : i32
    return %c0_i32, %c0_i32_0 : i32, i32
  }
  func.func @transform_2(%arg0: i32) -> (i32, i32) {
    %c0_i32 = arith.constant 0 : i32
    %c0_i32_0 = arith.constant 0 : i32
    %c0_i32_1 = arith.constant 0 : i32
    return %c0_i32, %c0_i32_0 : i32, i32
  }
  func.func @transform_3(%arg0: i32) -> (i32, i32) {
    %c0_i32 = arith.constant 0 : i32
    %c0_i32_0 = arith.constant 0 : i32
    %c0_i32_1 = arith.constant 0 : i32
    return %c0_i32, %c0_i32_0 : i32, i32
  }
  func.func @transform_4(%arg0: i32) -> (i32, i32) {
    %c0_i32 = arith.constant 0 : i32
    %c0_i32_0 = arith.constant 0 : i32
    %c0_i32_1 = arith.constant 0 : i32
    return %c0_i32, %c0_i32_0 : i32, i32
  }
  func.func @transform_5(%arg0: i32) -> (i32, i32) {
    %c0_i32 = arith.constant 0 : i32
    %c0_i32_0 = arith.constant 0 : i32
    return %c0_i32, %arg0 : i32, i32
  }
}

</mosaic_0001>

<bundles_post_ra>
// kernel: attn_weight_model.1
= control target key start
LH: loop header
LB: loop body
LE: loop exit
PB: predicated region body
PF: predicated region fallthrough
CT: control target
= control target key end

     0   :  { %v467_v3 = vmov 0.0   ;;  %vm468_vm0 = vmmov 0   ;;  %vm77_vm1 = vcmask 261120   ;;  %vm304_vm2 = vcmask 523264   ;;  %s584_s0 = inlined_call_operand.vmem [shape: f32[2,32,16], index: 0, kind: input, shape index: {}]   ;;  %s585_s1 = inlined_call_operand.vmem [shape: bf16[32,128], index: 1, kind: input, shape index: {}]   ;;  %s586_s2 = inlined_call_operand.vmem [shape: bf16[128,64], index: 2, kind: input, shape index: {}]   ;;  %s587_s3 = inlined_call_operand.vmem [shape: f32[2,128], index: 3, kind: input, shape index: {}]   ;;  %s588_s4 = inlined_call_operand.vmem [shape: f32[7,64], index: 4, kind: input, shape index: {}]   ;;  %s589_s5 = inlined_call_operand.vmem [shape: f32[16,128], index: 5, kind: output, shape index: {}]  }
   0x1   :  { %v43_v0 = vld [vmem:[%s584_s0] sm:$0xff]  ;;  %v44_v1 = vld [vmem:[%s584_s0 + $0x8] sm:$0xff]  ;;  %v45_v2 = vld [vmem:[%s584_s0 + $0x10] sm:$0xff]  ;;  %413 = vmatprep.subr.bf16.mxu1 %v467_v3  ;;  %417 = vmatprep.mubr.msk.bf16.mxu1 %vm468_vm0, %v467_v3  ;;  %vm372_vm3 = vcmask 1048064  }
   0x2   :  { %v47_v4 = vpack.c.bf16 %v44_v1, %v43_v0  ;;  %v46_v5 = vld [vmem:[%s584_s0 + $0x18] sm:$0xff]  ;;  %v382_v6 = vld [vmem:[%s584_s0 + $0x20] sm:$0xff]  ;;  %v383_v7 = vld [vmem:[%s584_s0 + $0x28] sm:$0xff] }
   0x3   :  { %v127_v8 = vpack.c.bf16 %v383_v7, %v382_v6  ;;  %v384_v9 = vld [vmem:[%s584_s0 + $0x30] sm:$0xff]  ;;  %v385_v10 = vld [vmem:[%s584_s0 + $0x38] sm:$0xff]  ;;  %v48_v11 = vpack.c.bf16 %v46_v5, %v45_v2  ;;  %v453_v12 = vld [vmem:[%s585_s1] sm:$0xff]  }
   0x4   :  { %49 = vxpose.xlu0.c.b16.start [1/2] (short) (narrow) %v47_v4, 16  ;;  %v128_v13 = vpack.c.bf16 %v385_v10, %v384_v9  ;;  %v454_v14 = vld [vmem:[%s585_s1 + $0x8] sm:$0xff]   ;;  %414 = vmatpush3.bf16.msra.mxu1 %v453_v12  ;;  %v455_v15 = vld [vmem:[%s586_s2] sm:$0xff]   ;;  %v457_v17 = vld [vmem:[%s586_s2 + $0x10] sm:$0xff]  }
   0x5   :  { %129 = vxpose.xlu1.c.b16.start [1/2] (short) (narrow) %v127_v8, 16  ;;  %415 = vmatprep.subr.bf16.mxu1 %v467_v3  ;;  %v456_v16 = vld [vmem:[%s586_s2 + $0x8] sm:$0xff]   ;;  %v458_v18 = vld [vmem:[%s586_s2 + $0x18] sm:$0xff]   ;;  %v459_v21 = vld [vmem:[%s586_s2 + $0x20] sm:$0xff]  }
   0x6   :  { %429 = vmatprep.subr.bf16.mxu0 %v455_v15  ;;  %v460_v22 = vld [vmem:[%s586_s2 + $0x28] sm:$0xff]   ;;  %v461_v23 = vld [vmem:[%s586_s2 + $0x30] sm:$0xff]   ;;  %v462_v24 = vld [vmem:[%s586_s2 + $0x38] sm:$0xff]  }
   0x7   :  { %430 = vmatpush3.bf16.msra.mxu0 %v455_v15  ;;  %v387_v25 = vld [vmem:[%s587_s3] ss:$0 sm:$0xff] }
   0x8   :  { %50 = vxpose.xlu0.c.b16.end [2/2] (short) (narrow) %v48_v11, 16  ;;  %416 = vmatpush3.bf16.msra.mxu1 %v454_v14  ;;  %v388_v44 = vld [vmem:[%s588_s4] ss:$0 sm:$0xff]  ;;  %s469_s4 = smov 64  }
   0x9   :  { %130 = vxpose.xlu1.c.b16.end [2/2] (short) (narrow) %v128_v13, 16  ;;  %431 = vmatprep.subr.bf16.mxu0 %v456_v16 }
   0xa   :  { %421 = vmatprep.subr.bf16.mxu1 %v467_v3 }
   0xb   :  { %432 = vmatpush3.bf16.msra.mxu0 %v456_v16 }
   0xc   :  { %433 = vmatprep.subr.bf16.mxu0 %v457_v17 }
   0xf   :  { %434 = vmatpush3.bf16.msra.mxu0 %v457_v17 }
  0x10   :  { %435 = vmatprep.subr.bf16.mxu0 %v458_v18 }
  0x13   :  { %436 = vmatpush3.bf16.msra.mxu0 %v458_v18 }
  0x14   :  { %437 = vmatprep.subr.bf16.mxu0 %v459_v21 }
  0x17   :  { %438 = vmatpush3.bf16.msra.mxu0 %v459_v21 }
  0x18   :  { %439 = vmatprep.subr.bf16.mxu0 %v460_v22 }
  0x1b   :  { %440 = vmatpush3.bf16.msra.mxu0 %v460_v22 }
  0x1c   :  { %441 = vmatprep.subr.bf16.mxu0 %v461_v23 }
  0x1f   :  { %442 = vmatpush3.bf16.msra.mxu0 %v461_v23 }
  0x20   :  { %443 = vmatprep.subr.bf16.mxu0 %v462_v24 }
  0x23   :  { %444 = vmatpush3.bf16.msra.mxu0 %v462_v24 }
  0x6a   :  { %v57_v19 = vpop.trf.xlu0 }
  0x6b   :  { %418 = vmatmul.mubr.msk.bf16.vlgmr.msra.gmra.mrb[0].mxu1 %vm77_vm1, %v57_v19  ;;  %v137_v20 = vpop.trf.xlu1 }
  0x6c   :  { %422 = vmatpush3.bf16.msra.mxu1 %v453_v12  ;;  %425 = vmatprep.mubr.msk.bf16.mxu1 %vm468_vm0, %v467_v3 }
  0x6d   :  { %423 = vmatprep.subr.bf16.mxu1 %v467_v3 }
  0x70   :  { %424 = vmatpush3.bf16.msra.mxu1 %v454_v14 }
  0x73   :  { %426 = vmatmul.mubr.msk.bf16.vlgmr.msra.gmra.mrb[4].mxu1 %vm77_vm1, %v137_v20 }
 0x13e   :  { %v115_v26 = vpop.f32.mrb[0].mxu1 }
 0x13f   :  { %v193_v27 = vadd.f32 %v387_v25, %v115_v26  ;;  %v419_v28 = vpop.f32.mrb[1].mxu1 }
 0x140   :  { %v118_v29 = vpop.f32.mrb[2].mxu1 }
 0x141   :  { %v194_v30 = vadd.f32 %v387_v25, %v118_v29  ;;  %v420_v31 = vpop.f32.mrb[3].mxu1  ;;  %v197_v32 = vmax.f32 %v193_v27, 0.0 }
 0x143   :  { %v198_v33 = vmax.f32 %v194_v30, 0.0 }
 0x145   :  { %v201_v34 = vpack.c.bf16 %v198_v33, %v197_v32 }
 0x146   :  { %v182_v35 = vpop.f32.mrb[4].mxu1 }
 0x147   :  { %v195_v36 = vadd.f32 %v387_v25, %v182_v35  ;;  %v427_v37 = vpop.f32.mrb[5].mxu1  ;;  %445 = vmatprep.mubr.bf16.mxu0 %v201_v34 }
 0x148   :  { %v185_v38 = vpop.f32.mrb[6].mxu1 }
 0x149   :  { %v196_v39 = vadd.f32 %v387_v25, %v185_v38  ;;  %v428_v40 = vpop.f32.mrb[7].mxu1  ;;  %v199_v41 = vmax.f32 %v195_v36, 0.0 }
 0x14b   :  { %v200_v42 = vmax.f32 %v196_v39, 0.0 }
 0x14d   :  { %v202_v43 = vpack.c.bf16 %v200_v42, %v199_v41 }
 0x14f   :  { %446 = vmatmul.mubr.bf16.vlgmr.msra.gmra.mrb[0].mxu0 %v202_v43 }
 0x222   :  { %v447_v45 = vpop.f32.mrb[0].mxu0 }
 0x223   :  { %v298_v46 = vadd.f32 %v447_v45, %v388_v44  ;;  %v289_v47 = vpop.f32.mrb[1].mxu0 }
 0x224   :  { %v290_v48 = vadd.f32 %v388_v44, %v289_v47  ;;  %v448_v49 = vpop.f32.mrb[2].mxu0 }
 0x225   :  { %v301_v50 = vadd.f32 %v448_v49, %v388_v44  ;;  %v292_v51 = vpop.f32.mrb[3].mxu0  ;;  %v334_v53 = vsel %vm304_vm2, %v298_v46, 0.0 }
 0x226   :  { %v293_v52 = vadd.f32 %v388_v44, %v292_v51  ;;  %v305_v55 = vsel %vm304_vm2, %v290_v48, 0.0 }
 0x227   :  { %v335_v54 = vsel %vm304_vm2, %v301_v50, 0.0 }
 0x228   :  { %v336_v56 = vadd.f32 %v335_v54, %v334_v53  ;;  %v306_v57 = vsel %vm304_vm2, %v293_v52, 0.0 }
 0x229   :  { %v307_v58 = vadd.f32 %v306_v57, %v305_v55 }
 0x22a   :  { %v337_v59 = vrot.slane %v336_v56, 4 }
 0x22b   :  { %v308_v60 = vrot.slane %v307_v58, 4 }
 0x22c   :  { %v338_v61 = vadd.f32 %v337_v59, %v336_v56 }
 0x22d   :  { %v309_v62 = vadd.f32 %v308_v60, %v307_v58 }
 0x22e   :  { %v339_v63 = vrot.slane %v338_v61, 2 }
 0x22f   :  { %v310_v0 = vrot.slane %v309_v62, 2 }
 0x230   :  { %v340_v1 = vadd.f32 %v339_v63, %v338_v61 }
 0x231   :  { %v311_v2 = vadd.f32 %v310_v0, %v309_v62 }
 0x232   :  { %v341_v3 = vrot.slane %v340_v1, 1 }
 0x233   :  { %v312_v4 = vrot.slane %v311_v2, 1 }
 0x234   :  { %v342_v5 = vadd.f32 %v341_v3, %v340_v1 }
 0x235   :  { %v313_v6 = vadd.f32 %v312_v4, %v311_v2 }
 0x236   :  { %v343_v7 = vmul.f32 0.0625, %v342_v5 }
 0x237   :  { %v315_v8 = vmul.f32 0.0625, %v313_v6 }
 0x238   :  { %v344_v9 = vsub.f32 %v298_v46, %v343_v7  ;;  %v345_v10 = vsub.f32 %v301_v50, %v343_v7 }
 0x239   :  { %v316_v11 = vsub.f32 %v290_v48, %v315_v8  ;;  %v317_v12 = vsub.f32 %v293_v52, %v315_v8 }
 0x23a   :  { %v346_v13 = vmul.f32 %v344_v9, %v344_v9  ;;  %v347_v14 = vmul.f32 %v345_v10, %v345_v10 }
 0x23b   :  { %v318_v15 = vmul.f32 %v316_v11, %v316_v11  ;;  %v319_v16 = vmul.f32 %v317_v12, %v317_v12 }
 0x23c   :  { %v348_v17 = vsel %vm304_vm2, %v346_v13, 0.0  ;;  %v349_v18 = vsel %vm304_vm2, %v347_v14, 0.0 }
 0x23d   :  { %v350_v19 = vadd.f32 %v349_v18, %v348_v17  ;;  %v320_v20 = vsel %vm304_vm2, %v318_v15, 0.0  ;;  %v321_v21 = vsel %vm304_vm2, %v319_v16, 0.0 }
 0x23e   :  { %v322_v22 = vadd.f32 %v321_v21, %v320_v20 }
 0x23f   :  { %v351_v23 = vrot.slane %v350_v19, 4 }
 0x240   :  { %v323_v24 = vrot.slane %v322_v22, 4 }
 0x241   :  { %v352_v25 = vadd.f32 %v351_v23, %v350_v19 }
 0x242   :  { %v324_v26 = vadd.f32 %v323_v24, %v322_v22 }
 0x243   :  { %v353_v27 = vrot.slane %v352_v25, 2 }
 0x244   :  { %v325_v28 = vrot.slane %v324_v26, 2 }
 0x245   :  { %v354_v29 = vadd.f32 %v353_v27, %v352_v25 }
 0x246   :  { %v326_v30 = vadd.f32 %v325_v28, %v324_v26 }
 0x247   :  { %v355_v31 = vrot.slane %v354_v29, 1 }
 0x248   :  { %v327_v32 = vrot.slane %v326_v30, 1 }
 0x249   :  { %v356_v33 = vadd.f32 %v355_v31, %v354_v29 }
 0x24a   :  { %v328_v34 = vadd.f32 %v327_v32, %v326_v30 }
 0x24b   :  { %v357_v35 = vmul.f32 0.0625, %v356_v33 }
 0x24c   :  { %v329_v36 = vmul.f32 0.0625, %v328_v34 }
 0x24d   :  { %v358_v37 = vadd.f32 1e-05, %v357_v35 }
 0x24e   :  { %v330_v38 = vadd.f32 1e-05, %v329_v36 }
 0x24f   :  { %463 = vrsqrt.f32 %v358_v37 }
 0x250   :  { %465 = vrsqrt.f32 %v330_v38 }
 0x259   :  { %v464_v39 = vpop.eup %463 }
 0x25a   :  { %v466_v40 = vpop.eup %465  ;;  %v361_v41 = vmul.f32 %v464_v39, %v345_v10  ;;  %v360_v42 = vmul.f32 %v464_v39, %v344_v9 }
 0x25b   :  { %v332_v43 = vmul.f32 %v466_v40, %v316_v11  ;;  %v333_v44 = vmul.f32 %v466_v40, %v317_v12 }
 0x25c   :  { %368 = vrot.lane.b32.xlu1 %v361_v41, %s469_s4  ;;  %366 = vrot.lane.b32.xlu0 %v360_v42, %s469_s4 }
 0x25d   :  { %363 = vst.msk [vmem:[%s589_s5 + $0x8] sm:$0xff] %vm304_vm2, %v333_v44  ;;  %362 = vst.msk [vmem:[%s589_s5] sm:$0xff] %vm304_vm2, %v332_v43 }
 0x2ce   :  { %v369_v45 = vpop.permute.xlu1 %368  ;;  %v367_v46 = vpop.permute.xlu0 %366 }
 0x2cf   :  { %374 = vst.msk [vmem:[%s589_s5 + $0x8] sm:$0xff] %vm372_vm3, %v369_v45  ;;  %373 = vst.msk [vmem:[%s589_s5] sm:$0xff] %vm372_vm3, %v367_v46 }

</bundles_post_ra>
